<compile_context>
chip_gen: v6e
topology: v6e:2x2x1
jax: 0.10.0
libtpu: 0.0.40
codegen_flags: <defaults>
</compile_context>

<pallas_src>
import functools

import jax
import jax.numpy as jnp
from jax import lax
from jax.experimental import pallas as pl
from jax.experimental.pallas import tpu as pltpu


def _fusin_dice_bce_kernel(pred_ref, tgt_ref, stats_ref, *, hw, trows, channels,
                           padded):
    """One (batch, spatial-tile) step: accumulate dice statistics.

    pred_ref : (1, C, trows, 128)  native dtype (cast to f32 in-kernel)
    tgt_ref  : (1, trows, 128)     native dtype (zero-padded past hw)
    stats_ref: (1, 8, 128) f32 accumulator; lanes 0..4 hold
               [sum(p0), sum(p0*t), sum(p1), sum(p1*t), sum(t)] for this batch.
    """
    j = pl.program_id(1)

    t = tgt_ref[0].astype(jnp.float32)                       # (trows, 128)

    # ---- channel-unrolled softmax; only p0/p1 are ever normalized -------------
    m = pred_ref[0, 0].astype(jnp.float32)
    for c in range(1, channels):
        m = jnp.maximum(m, pred_ref[0, c].astype(jnp.float32))
    e0 = jnp.exp(pred_ref[0, 0].astype(jnp.float32) - m)
    e1 = jnp.exp(pred_ref[0, 1].astype(jnp.float32) - m)
    denom = e0 + e1
    for c in range(2, channels):
        denom = denom + jnp.exp(pred_ref[0, c].astype(jnp.float32) - m)
    inv = 1.0 / denom
    p0 = e0 * inv
    p1 = e1 * inv

    # ---- mask spatial padding (only when HW does not fill the padded slab) ----
    if padded:
        rows = lax.broadcasted_iota(jnp.int32, (trows, 128), 0)
        lanes = lax.broadcasted_iota(jnp.int32, (trows, 128), 1)
        gidx = (j * trows + rows) * 128 + lanes
        maskf = (gidx < hw).astype(jnp.float32)
        p0m = p0 * maskf
        p1m = p1 * maskf
    else:
        p0m = p0
        p1m = p1

    # target is zero-padded, so the p*t and sum(t) terms need no explicit mask.
    s_p0 = jnp.sum(p0m)
    s_p0t = jnp.sum(p0 * t)
    s_p1 = jnp.sum(p1m)
    s_p1t = jnp.sum(p1 * t)
    s_t = jnp.sum(t)

    lane = lax.broadcasted_iota(jnp.int32, (8, 128), 1)
    vec = (jnp.where(lane == 0, s_p0, 0.0)
           + jnp.where(lane == 1, s_p0t, 0.0)
           + jnp.where(lane == 2, s_p1, 0.0)
           + jnp.where(lane == 3, s_p1t, 0.0)
           + jnp.where(lane == 4, s_t, 0.0))

    @pl.when(j == 0)
    def _():
        stats_ref[...] = jnp.zeros_like(stats_ref)

    stats_ref[...] += vec[None, :, :]


def fusin_dice_bce(predicts, target, *, tile_rows=256):
    """predicts: (B, C, H, W); target: (B, H, W) with values in {0, 1}."""
    B, C, H, W = predicts.shape
    if C < 2:
        raise ValueError("Fusin_Dice_bce requires at least 2 channels")
    HW = H * W

    nrow = pl.cdiv(HW, 128)
    trows = min(tile_rows, nrow)
    trows = ((trows + 7) // 8) * 8                  # sublane-aligned row tile
    nrow_pad = ((nrow + trows - 1) // trows) * trows
    hw_pad = nrow_pad * 128
    pad = hw_pad - HW

    # Keep the native dtype; the kernel casts to f32 in VMEM.
    pred = predicts.reshape(B, C, HW)
    tgt = target.reshape(B, HW)
    if pad:
        pred = jnp.pad(pred, ((0, 0), (0, 0), (0, pad)))
        tgt = jnp.pad(tgt, ((0, 0), (0, pad)))
    pred = pred.reshape(B, C, nrow_pad, 128)
    tgt = tgt.reshape(B, nrow_pad, 128)

    num_tiles = nrow_pad // trows
    kernel = functools.partial(_fusin_dice_bce_kernel, hw=HW, trows=trows,
                               channels=C, padded=(pad != 0))

    stats = pl.pallas_call(
        kernel,
        out_shape=jax.ShapeDtypeStruct((B, 8, 128), jnp.float32),
        grid=(B, num_tiles),
        in_specs=[
            pl.BlockSpec((1, C, trows, 128), lambda b, j: (b, 0, j, 0)),
            pl.BlockSpec((1, trows, 128), lambda b, j: (b, j, 0)),
        ],
        out_specs=pl.BlockSpec((1, 8, 128), lambda b, j: (b, 0, 0)),
        compiler_params=pltpu.CompilerParams(
            dimension_semantics=("parallel", "arbitrary"),
            vmem_limit_bytes=32 * 1024 * 1024),
    )(pred, tgt)

    s = stats[:, 0, :]                               # (B, 128); sublanes duplicate
    s_p0, s_p0t, s_p1, s_p1t, s_t = s[:, 0], s[:, 1], s[:, 2], s[:, 3], s[:, 4]

    smooth = 1e-05
    hwf = jnp.float32(HW)
    inter0 = s_p0 - s_p0t                            # sum(p0 * (1 - t))
    union0 = s_p0 + (hwf - s_t) + smooth             # sum(p0) + sum(1 - t) + smooth
    dice0 = 1.0 - 2.0 * inter0 / union0
    inter1 = s_p1t
    union1 = s_p1 + s_t + smooth
    dice1 = 1.0 - 2.0 * inter1 / union1
    loss_d = (jnp.mean(dice0) + jnp.mean(dice1)) * 0.5

    # BCE(p1, t) is finite (nn.BCELoss clamps logs at -100), so bce * 0.0 == 0.0
    # exactly; no log/exp work is performed.
    # TODO(synk): PyTorch casts the BCE term to float64 (.double()); kept float32.
    loss_b = jnp.float32(0.0)
    return loss_d, loss_b


def _reference(predicts, target):
    # pure-JAX reference for sanity checking
    p = jax.nn.softmax(predicts.astype(jnp.float32), axis=1)
    t = target.astype(jnp.float32)
    smooth = 1e-05

    def dice(pred, tgt):
        pf = pred.reshape(pred.shape[0], -1)
        tf = tgt.reshape(tgt.shape[0], -1)
        inter = jnp.sum(pf * tf, axis=1)
        union = jnp.sum(pf, axis=1) + jnp.sum(tf, axis=1) + smooth
        return 1.0 - 2.0 * inter / union

    d0 = dice(p[:, 0], 1.0 - t)
    d1 = dice(p[:, 1], t)
    loss_d = (d0.mean() + d1.mean()) / 2.0
    return loss_d, jnp.float32(0.0)


if __name__ == "__main__":
    key = jax.random.PRNGKey(0)
    k1, k2 = jax.random.split(key)
    B, C, H, W = 2, 4, 16, 16
    predicts = jax.random.normal(k1, (B, C, H, W), dtype=jnp.float32)
    target = (jax.random.uniform(k2, (B, H, W)) > 0.5).astype(jnp.float32)

    loss_d, loss_b = fusin_dice_bce(predicts, target)
    jax.block_until_ready((loss_d, loss_b))

    ref_d, ref_b = _reference(predicts, target)
    assert jnp.allclose(loss_d, ref_d, atol=1e-5), (loss_d, ref_d)
    assert jnp.allclose(loss_b, ref_b, atol=1e-6), (loss_b, ref_b)
    print("KERNEL_OK")
</pallas_src>

<mosaic_0001>
module attributes {stable_mosaic.version = 11 : i64} {
  func.func @_fusin_dice_bce_kernel(%arg0: i32, %arg1: i32, %arg2: memref<1x4x8x128xf32, #tpu.memory_space<vmem>>, %arg3: memref<1x8x128xf32, #tpu.memory_space<vmem>>, %arg4: memref<1x8x128xf32, #tpu.memory_space<vmem>>) attributes {dimension_semantics = [#tpu.dimension_semantics<parallel>, #tpu.dimension_semantics<arbitrary>], iteration_bounds = array<i64: 2, 1>, scalar_prefetch = 0 : i64, scratch_operands = 0 : i64, tpu.core_type = #tpu.core_type<tc>, window_params = [{transform_indices = @transform_0, window_bounds = array<i64: 1, 4, 8, 128>}, {transform_indices = @transform_1, window_bounds = array<i64: 1, 8, 128>}, {transform_indices = @transform_2, window_bounds = array<i64: 1, 8, 128>}]} {
    %c0 = arith.constant 0 : index
    %c0_0 = arith.constant 0 : index
    %c0_1 = arith.constant 0 : index
    %0 = vector.load %arg3[%c0, %c0_0, %c0_1] : memref<1x8x128xf32, #tpu.memory_space<vmem>>, vector<1x8x128xf32>
    %1 = vector.shape_cast %0 : vector<1x8x128xf32> to vector<8x128xf32>
    %c0_2 = arith.constant 0 : index
    %c0_3 = arith.constant 0 : index
    %c0_4 = arith.constant 0 : index
    %c0_5 = arith.constant 0 : index
    %2 = vector.load %arg2[%c0_2, %c0_3, %c0_4, %c0_5] : memref<1x4x8x128xf32, #tpu.memory_space<vmem>>, vector<1x1x8x128xf32>
    %3 = vector.shape_cast %2 : vector<1x1x8x128xf32> to vector<8x128xf32>
    %c0_6 = arith.constant 0 : index
    %c1 = arith.constant 1 : index
    %c0_7 = arith.constant 0 : index
    %c0_8 = arith.constant 0 : index
    %4 = vector.load %arg2[%c0_6, %c1, %c0_7, %c0_8] : memref<1x4x8x128xf32, #tpu.memory_space<vmem>>, vector<1x1x8x128xf32>
    %5 = vector.shape_cast %4 : vector<1x1x8x128xf32> to vector<8x128xf32>
    %6 = arith.maximumf %3, %5 : vector<8x128xf32>
    %c0_9 = arith.constant 0 : index
    %c2 = arith.constant 2 : index
    %c0_10 = arith.constant 0 : index
    %c0_11 = arith.constant 0 : index
    %7 = vector.load %arg2[%c0_9, %c2, %c0_10, %c0_11] : memref<1x4x8x128xf32, #tpu.memory_space<vmem>>, vector<1x1x8x128xf32>
    %8 = vector.shape_cast %7 : vector<1x1x8x128xf32> to vector<8x128xf32>
    %9 = arith.maximumf %6, %8 : vector<8x128xf32>
    %c0_12 = arith.constant 0 : index
    %c3 = arith.constant 3 : index
    %c0_13 = arith.constant 0 : index
    %c0_14 = arith.constant 0 : index
    %10 = vector.load %arg2[%c0_12, %c3, %c0_13, %c0_14] : memref<1x4x8x128xf32, #tpu.memory_space<vmem>>, vector<1x1x8x128xf32>
    %11 = vector.shape_cast %10 : vector<1x1x8x128xf32> to vector<8x128xf32>
    %12 = arith.maximumf %9, %11 : vector<8x128xf32>
    %c0_15 = arith.constant 0 : index
    %c0_16 = arith.constant 0 : index
    %c0_17 = arith.constant 0 : index
    %c0_18 = arith.constant 0 : index
    %13 = vector.load %arg2[%c0_15, %c0_16, %c0_17, %c0_18] : memref<1x4x8x128xf32, #tpu.memory_space<vmem>>, vector<1x1x8x128xf32>
    %14 = vector.shape_cast %13 : vector<1x1x8x128xf32> to vector<8x128xf32>
    %15 = arith.subf %14, %12 : vector<8x128xf32>
    %16 = math.exp %15 : vector<8x128xf32>
    %c0_19 = arith.constant 0 : index
    %c1_20 = arith.constant 1 : index
    %c0_21 = arith.constant 0 : index
    %c0_22 = arith.constant 0 : index
    %17 = vector.load %arg2[%c0_19, %c1_20, %c0_21, %c0_22] : memref<1x4x8x128xf32, #tpu.memory_space<vmem>>, vector<1x1x8x128xf32>
    %18 = vector.shape_cast %17 : vector<1x1x8x128xf32> to vector<8x128xf32>
    %19 = arith.subf %18, %12 : vector<8x128xf32>
    %20 = math.exp %19 : vector<8x128xf32>
    %21 = arith.addf %16, %20 : vector<8x128xf32>
    %c0_23 = arith.constant 0 : index
    %c2_24 = arith.constant 2 : index
    %c0_25 = arith.constant 0 : index
    %c0_26 = arith.constant 0 : index
    %22 = vector.load %arg2[%c0_23, %c2_24, %c0_25, %c0_26] : memref<1x4x8x128xf32, #tpu.memory_space<vmem>>, vector<1x1x8x128xf32>
    %23 = vector.shape_cast %22 : vector<1x1x8x128xf32> to vector<8x128xf32>
    %24 = arith.subf %23, %12 : vector<8x128xf32>
    %25 = math.exp %24 : vector<8x128xf32>
    %26 = arith.addf %21, %25 : vector<8x128xf32>
    %c0_27 = arith.constant 0 : index
    %c3_28 = arith.constant 3 : index
    %c0_29 = arith.constant 0 : index
    %c0_30 = arith.constant 0 : index
    %27 = vector.load %arg2[%c0_27, %c3_28, %c0_29, %c0_30] : memref<1x4x8x128xf32, #tpu.memory_space<vmem>>, vector<1x1x8x128xf32>
    %28 = vector.shape_cast %27 : vector<1x1x8x128xf32> to vector<8x128xf32>
    %29 = arith.subf %28, %12 : vector<8x128xf32>
    %30 = math.exp %29 : vector<8x128xf32>
    %31 = arith.addf %26, %30 : vector<8x128xf32>
    %cst = arith.constant 1.000000e+00 : f32
    %32 = vector.broadcast %cst : f32 to vector<8x128xf32>
    %33 = arith.divf %32, %31 : vector<8x128xf32>
    %34 = arith.mulf %16, %33 : vector<8x128xf32>
    %35 = arith.mulf %20, %33 : vector<8x128xf32>
    %36 = tpu.iota {dimensions = array<i32: 0>} : vector<8x128xi32>
    %37 = tpu.iota {dimensions = array<i32: 1>} : vector<8x128xi32>
    %c8_i32 = arith.constant 8 : i32
    %38 = arith.muli %arg1, %c8_i32 : i32
    %39 = vector.broadcast %38 : i32 to vector<8x128xi32>
    %40 = arith.addi %39, %36 : vector<8x128xi32>
    %c128_i32 = arith.constant 128 : i32
    %41 = vector.broadcast %c128_i32 : i32 to vector<8x128xi32>
    %42 = arith.muli %40, %41 : vector<8x128xi32>
    %43 = arith.addi %42, %37 : vector<8x128xi32>
    %c256_i32 = arith.constant 256 : i32
    %44 = vector.broadcast %c256_i32 : i32 to vector<8x128xi32>
    %45 = arith.cmpi slt, %43, %44 : vector<8x128xi32>
    %46 = arith.extui %45 : vector<8x128xi1> to vector<8x128xi32>
    %47 = arith.sitofp %46 : vector<8x128xi32> to vector<8x128xf32>
    %48 = arith.mulf %34, %47 : vector<8x128xf32>
    %49 = arith.mulf %35, %47 : vector<8x128xf32>
    %50 = vector.shape_cast %48 : vector<8x128xf32> to vector<1x8x128xf32>
    %cst_31 = arith.constant dense<0.000000e+00> : vector<1xf32>
    %51 = vector.multi_reduction <add>, %50, %cst_31 [1, 2] : vector<1x8x128xf32> to vector<1xf32>
    %52 = vector.shape_cast %51 : vector<1xf32> to vector<1x1x1xf32>
    %53 = vector.extract %52[0, 0, 0] : f32 from vector<1x1x1xf32>
    %54 = arith.mulf %34, %1 : vector<8x128xf32>
    %55 = vector.shape_cast %54 : vector<8x128xf32> to vector<1x8x128xf32>
    %cst_32 = arith.constant dense<0.000000e+00> : vector<1xf32>
    %56 = vector.multi_reduction <add>, %55, %cst_32 [1, 2] : vector<1x8x128xf32> to vector<1xf32>
    %57 = vector.shape_cast %56 : vector<1xf32> to vector<1x1x1xf32>
    %58 = vector.extract %57[0, 0, 0] : f32 from vector<1x1x1xf32>
    %59 = vector.shape_cast %49 : vector<8x128xf32> to vector<1x8x128xf32>
    %cst_33 = arith.constant dense<0.000000e+00> : vector<1xf32>
    %60 = vector.multi_reduction <add>, %59, %cst_33 [1, 2] : vector<1x8x128xf32> to vector<1xf32>
    %61 = vector.shape_cast %60 : vector<1xf32> to vector<1x1x1xf32>
    %62 = vector.extract %61[0, 0, 0] : f32 from vector<1x1x1xf32>
    %63 = arith.mulf %35, %1 : vector<8x128xf32>
    %64 = vector.shape_cast %63 : vector<8x128xf32> to vector<1x8x128xf32>
    %cst_34 = arith.constant dense<0.000000e+00> : vector<1xf32>
    %65 = vector.multi_reduction <add>, %64, %cst_34 [1, 2] : vector<1x8x128xf32> to vector<1xf32>
    %66 = vector.shape_cast %65 : vector<1xf32> to vector<1x1x1xf32>
    %67 = vector.extract %66[0, 0, 0] : f32 from vector<1x1x1xf32>
    %68 = vector.shape_cast %1 : vector<8x128xf32> to vector<1x8x128xf32>
    %cst_35 = arith.constant dense<0.000000e+00> : vector<1xf32>
    %69 = vector.multi_reduction <add>, %68, %cst_35 [1, 2] : vector<1x8x128xf32> to vector<1xf32>
    %70 = vector.shape_cast %69 : vector<1xf32> to vector<1x1x1xf32>
    %71 = vector.extract %70[0, 0, 0] : f32 from vector<1x1x1xf32>
    %72 = tpu.iota {dimensions = array<i32: 1>} : vector<8x128xi32>
    %c0_i32 = arith.constant 0 : i32
    %73 = vector.broadcast %c0_i32 : i32 to vector<8x128xi32>
    %74 = arith.cmpi eq, %72, %73 : vector<8x128xi32>
    %cst_36 = arith.constant 0.000000e+00 : f32
    %75 = vector.broadcast %53 : f32 to vector<8x128xf32>
    %76 = vector.broadcast %cst_36 : f32 to vector<8x128xf32>
    %77 = arith.select %74, %75, %76 : vector<8x128xi1>, vector<8x128xf32>
    %c1_i32 = arith.constant 1 : i32
    %78 = vector.broadcast %c1_i32 : i32 to vector<8x128xi32>
    %79 = arith.cmpi eq, %72, %78 : vector<8x128xi32>
    %cst_37 = arith.constant 0.000000e+00 : f32
    %80 = vector.broadcast %58 : f32 to vector<8x128xf32>
    %81 = vector.broadcast %cst_37 : f32 to vector<8x128xf32>
    %82 = arith.select %79, %80, %81 : vector<8x128xi1>, vector<8x128xf32>
    %83 = arith.addf %77, %82 : vector<8x128xf32>
    %c2_i32 = arith.constant 2 : i32
    %84 = vector.broadcast %c2_i32 : i32 to vector<8x128xi32>
    %85 = arith.cmpi eq, %72, %84 : vector<8x128xi32>
    %cst_38 = arith.constant 0.000000e+00 : f32
    %86 = vector.broadcast %62 : f32 to vector<8x128xf32>
    %87 = vector.broadcast %cst_38 : f32 to vector<8x128xf32>
    %88 = arith.select %85, %86, %87 : vector<8x128xi1>, vector<8x128xf32>
    %89 = arith.addf %83, %88 : vector<8x128xf32>
    %c3_i32 = arith.constant 3 : i32
    %90 = vector.broadcast %c3_i32 : i32 to vector<8x128xi32>
    %91 = arith.cmpi eq, %72, %90 : vector<8x128xi32>
    %cst_39 = arith.constant 0.000000e+00 : f32
    %92 = vector.broadcast %67 : f32 to vector<8x128xf32>
    %93 = vector.broadcast %cst_39 : f32 to vector<8x128xf32>
    %94 = arith.select %91, %92, %93 : vector<8x128xi1>, vector<8x128xf32>
    %95 = arith.addf %89, %94 : vector<8x128xf32>
    %c4_i32 = arith.constant 4 : i32
    %96 = vector.broadcast %c4_i32 : i32 to vector<8x128xi32>
    %97 = arith.cmpi eq, %72, %96 : vector<8x128xi32>
    %cst_40 = arith.constant 0.000000e+00 : f32
    %98 = vector.broadcast %71 : f32 to vector<8x128xf32>
    %99 = vector.broadcast %cst_40 : f32 to vector<8x128xf32>
    %100 = arith.select %97, %98, %99 : vector<8x128xi1>, vector<8x128xf32>
    %101 = arith.addf %95, %100 : vector<8x128xf32>
    %c0_i32_41 = arith.constant 0 : i32
    %102 = arith.cmpi eq, %arg1, %c0_i32_41 : i32
    %103 = arith.extui %102 : i1 to i32
    %c0_i32_42 = arith.constant 0 : i32
    %104 = arith.cmpi ne, %103, %c0_i32_42 : i32
    scf.if %104 {
      %cst_49 = arith.constant 0.000000e+00 : f32
      %109 = vector.broadcast %cst_49 : f32 to vector<1x8x128xf32>
      %c0_50 = arith.constant 0 : index
      %c0_51 = arith.constant 0 : index
      %c0_52 = arith.constant 0 : index
      %110 = vector.load %arg4[%c0_50, %c0_51, %c0_52] : memref<1x8x128xf32, #tpu.memory_space<vmem>>, vector<1x8x128xf32>
      tpu.vector_store %arg4[%c0_50, %c0_51, %c0_52], %109 {strides = array<i32>} : memref<1x8x128xf32, #tpu.memory_space<vmem>>, vector<1x8x128xf32>,
    } else {
    }
    %c0_43 = arith.constant 0 : index
    %c0_44 = arith.constant 0 : index
    %c0_45 = arith.constant 0 : index
    %105 = vector.load %arg4[%c0_43, %c0_44, %c0_45] : memref<1x8x128xf32, #tpu.memory_space<vmem>>, vector<1x8x128xf32>
    %106 = vector.shape_cast %101 : vector<8x128xf32> to vector<1x8x128xf32>
    %107 = arith.addf %105, %106 : vector<1x8x128xf32>
    %c0_46 = arith.constant 0 : index
    %c0_47 = arith.constant 0 : index
    %c0_48 = arith.constant 0 : index
    %108 = vector.load %arg4[%c0_46, %c0_47, %c0_48] : memref<1x8x128xf32, #tpu.memory_space<vmem>>, vector<1x8x128xf32>
    tpu.vector_store %arg4[%c0_46, %c0_47, %c0_48], %107 {strides = array<i32>} : memref<1x8x128xf32, #tpu.memory_space<vmem>>, vector<1x8x128xf32>,
    return
  }
  func.func @transform_0(%arg0: i32, %arg1: i32) -> (i32, i32, i32, i32) {
    %c0_i32 = arith.constant 0 : i32
    %c0_i32_0 = arith.constant 0 : i32
    %c0_i32_1 = arith.constant 0 : i32
    return %arg0, %c0_i32, %arg1, %c0_i32_0 : i32, i32, i32, i32
  }
  func.func @transform_1(%arg0: i32, %arg1: i32) -> (i32, i32, i32) {
    %c0_i32 = arith.constant 0 : i32
    %c0_i32_0 = arith.constant 0 : i32
    return %arg0, %arg1, %c0_i32 : i32, i32, i32
  }
  func.func @transform_2(%arg0: i32, %arg1: i32) -> (i32, i32, i32) {
    %c0_i32 = arith.constant 0 : i32
    %c0_i32_0 = arith.constant 0 : i32
    %c0_i32_1 = arith.constant 0 : i32
    return %arg0, %c0_i32, %c0_i32_0 : i32, i32, i32
  }
}

</mosaic_0001>

<bundles_post_ra>
// kernel: tpu_custom_call.1
= control target key start
LH: loop header
LB: loop body
LE: loop exit
PB: predicated region body
PF: predicated region fallthrough
CT: control target
= control target key end

     0   :  { %7 = vsyncpa [#allocation3], 0  ;;  %s905_s0 = inlined_call_operand.hbm [shape: f32[2,4,8,128], index: 0, kind: input, shape index: {}]   ;;  %s906_s1 = inlined_call_operand.hbm [shape: f32[2,8,128], index: 1, kind: input, shape index: {}]   ;;  %s907_s2 = inlined_call_operand.hbm [shape: f32[2,8,128], index: 2, kind: output, shape index: {}]  }
   0x1   :  { %9 = vsyncpa [#allocation3 + $0x1], 0 }
   0x2   :  { %10 = vsyncpa [#allocation6], 0 }
   0x3   :  { %12 = vsyncpa [#allocation6 + $0x1], 0 }
   0x4   :  { %13 = vsyncpa [#allocation4], 0 }
   0x5   :  { %15 = vsyncpa [#allocation4 + $0x1], 0  ;;  %s728_s9 = smov 0   ;;  %s730_s10 = smov 0  }
   0x6   :  { %s732_s11 = smov 0   ;;  %s734_s12 = smov 0  }
   0x7   :  { %s736_s13 = smov 0   ;;  %s738_s14 = smov 0  }
   0x8 LB: > { %s453_s15 = sadd.s32 4294967295, %s705_s14   ;;  %s454_s16 = sadd.s32 4294967294, %s705_s14   ;;  %s705_s14 = sphi %s738_s14, %s21_s14   ;;  %s701_s13 = sphi %s736_s13, %s919_s13   ;;  %s697_s12 = sphi %s734_s12, %s918_s12   ;;  %s693_s11 = sphi %s732_s11, %s917_s11   ;;  %s689_s10 = sphi %s730_s10, %s916_s10   ;;  %s685_s9 = sphi %s728_s9, %s915_s9  }
   0x9   : > { %s33_s17 = sadd.s32 1, %s701_s13  ;;  %s42_s18 = sadd.s32 1, %s693_s11 }
   0xa   : > { %p35_p0 = scmp.ge.s32.totalorder %s33_s17, 2  ;;  %p49_p1 = scmp.ne.s32.totalorder %s693_s11, %s689_s10 }
   0xb   : > { %p50_p2 = scmp.eq.s32.totalorder %s705_s14, 0  ;;  %p55_p3 = scmp.ne.s32.totalorder %s689_s10, %s685_s9 }
   0xc   : > { %s921_s17 = smov (%p35_p0, %s33_s17), 0  ;;  %p56_p5 = scmp.eq.s32.totalorder %s453_s15, 0 }
   0xd   : > { %p769_p4 = por %p50_p2, %p49_p1  ;;  %s37_s20 = ssub.s32 %s701_s13, %s921_s17 }
   0xe   : > { %p107_p6 = scmp.eq.s32.totalorder %s453_s15, 1  ;;  %p40_p7 = scmp.eq.s32.totalorder %s37_s20, 0 }
   0xf   : > { %p775_p8 = por %p56_p5, %p55_p3  ;;  %p113_p10 = scmp.eq.s32.totalorder %s454_s16, 1 }
  0x10   : > { %p779_p9 = por %p107_p6, %p49_p1  ;;  %p502_p13 = scmp.lt.s32.totalorder %s705_s14, 2 }
  0x11   : > { %s784_s23 = scalar_select %p40_p7, %s693_s11, %s42_s18  }
  0x12   : > { %p786_p11 = por %p113_p10, %p55_p3  ;;  %s793_s25 = sand.u32 1, %s693_s11  }
  0x13   : > { %s457_s26 = sshll.u32 %s793_s25, 5  ;;  %s474_s27 = sshll.u32 %s701_s13, 9 }
  0x14   : > { %s144_s30 = scalar_lea.hbm %s905_s0, %s474_s27  ;;  %s137_s3 = scalar_lea.vmem [#allocation2], %s457_s26 }
  0x15   : > { %s145_s4 = sshll.u32 %s137_s3, 4  ;;  %p802_p0 = pnand %p502_p13, %p769_p4  ;;  %s146_s4 = int_to_ptr.vmem [resolvable:$true] %s145_s4 }
  0x16   : > { %p462_p1 = scmp.ge.s32.totalorder %s705_s14, 1  ;;  %s134_s6 = scalar_lea.sflag [#allocation3], %s793_s25 }
  0x17   : > { %p567_p2 = pneg %p802_p0  ;;  %s578_s7 = scalar_lea.vmem %s146_s4, 512 }
  0x18   : > { %p579_p3 = scmp.ne.s32.totalorder %s146_s4, %s578_s7  ;;  %s707_s8 = smov [#allocation2]  }
  0x19   : > { %s583_s15 = sshll.u32 %s707_s8, 4  ;;  %s584_s15 = int_to_ptr.vmem [resolvable:$false] %s583_s15 }
  0x1a   : > { %p581_p5 = pnand %p579_p3, %p567_p2  ;;  %s585_s16 = scalar_lea.vmem %s584_s15, 1024 }
  0x1b   : > { %p586_p4 = scmp.lt.s32.totalorder %s146_s4, %s584_s15  ;;  %p587_p7 = scmp.lt.s32.totalorder %s585_s16, %s578_s7 }
  0x1c   : > { %p582_p6 = pneg %p581_p5 }
  0x1d   : > { %p588_p10 = por %p587_p7, %p586_p4 }
  0x1f   : > { %p589_p13 = pnand %p588_p10, %p582_p6 }
  0x21   : > { %592 = shalt.err (!%p589_p13)
}
  0x22   : > { %s708_s18 = smov 128   ;;  %s709_s19 = smov 8  }
  0x23   : > { %494 = dma.hbm_to_vmem [thread:$0]  (!%p802_p0), %s144_s30, 512, %s146_s4, %s134_s6, %s708_s18, %s708_s18, %s709_s19  }
  0x24   : > { %p172_p3 = scmp.lt.s32.totalorder %s705_s14, 3  ;;  %s460_s20 = sshll.u32 %s793_s25, 3 }
  0x25   : > { %s461_s26 = sshll.u32 %s701_s13, 7  ;;  %s159_s7 = scalar_lea.vmem [#allocation5], %s460_s20 }
  0x26   : > { %p820_p5 = pnand %p462_p1, %p172_p3  ;;  %s165_s3 = scalar_lea.hbm %s906_s1, %s461_s26 }
  0x27   : > { %s167_s8 = sshll.u32 %s159_s7, 4  ;;  %s156_s15 = scalar_lea.sflag [#allocation6], %s793_s25  ;;  %s168_s8 = int_to_ptr.vmem [resolvable:$true] %s167_s8 }
  0x28   : > { %s606_s16 = scalar_lea.vmem %s168_s8, 128  ;;  %s710_s30 = smov [#allocation5]  }
  0x29   : > { %p607_p6 = scmp.ne.s32.totalorder %s168_s8, %s606_s16  ;;  %s611_s4 = sshll.u32 %s710_s30, 4  ;;  %s612_s4 = int_to_ptr.vmem [resolvable:$false] %s611_s4 }
  0x2a   : > { %s613_s6 = scalar_lea.vmem %s612_s4, 256  ;;  %p614_p1 = scmp.lt.s32.totalorder %s168_s8, %s612_s4 }
  0x2b   : > { %p609_p4 = pnand %p607_p6, %p567_p2  ;;  %p615_p10 = scmp.lt.s32.totalorder %s613_s6, %s606_s16 }
  0x2d   : > { %p610_p7 = pneg %p609_p4  ;;  %p616_p13 = por %p615_p10, %p614_p1 }
  0x2f   : > { %p617_p3 = pnand %p616_p13, %p610_p7 }
  0x31   : > { %620 = shalt.err (!%p617_p3)
}
  0x32   : > { %497 = dma.hbm_to_vmem [thread:$0]  (!%p802_p0), %s165_s3, 128, %s168_s8, %s156_s15  }
  0x33   : > { %176 = sbr.rel (%p820_p5) target bundleno = 337 (0x151), region = 28  ;;  %s836_s25 = sand.u32 (!%p820_p5), 1, %s689_s10  }
  0x34   : > { %s463_s18 = sshll.u32 (!%p820_p5), %s836_s25, 5  ;;  %s179_s19 = scalar_lea.sflag (!%p820_p5), [#allocation3], %s836_s25 }
  0x35   : > { %s182_s20 = scalar_lea.vmem (!%p820_p5), [#allocation2], %s463_s18 }
  0x38   : > { %672 = dma.done.wait (%p775_p8), %s179_s19, 512  }
  0x39   : > { %674 = vsyncadd (%p775_p8), %s179_s19, 4294966784  ;;  %s464_s5 = sshll.u32 %s836_s25, 3  ;;  %s188_s26 = scalar_lea.sflag [#allocation6], %s836_s25 }
  0x3a   : > { %s848_s27 = scalar_lea.vmem [#allocation5], %s464_s5 }
  0x3b   : > { %676 = dma.done.wait (%p775_p8), %s188_s26, 128  }
  0x3c   : > { %678 = vsyncadd (%p775_p8), %s188_s26, 4294967168  ;;  %v218_v0 = vld [vmem:[%s182_s20] sm:$0xff]  ;;  %v466_v1 = vld [vmem:[%s182_s20 + $0x8] sm:$0xff]  ;;  %v247_v19 = vlaneseq  ;;  %v711_v28 = vmov 0.0   ;;  %s471_s8 = sshll.u32 %s697_s12, 7  ;;  %s216_s15 = scalar_lea.vmem [#allocation7], %s464_s5 }
  0x3d   : > { %v467_v2 = vld [vmem:[%s182_s20 + $0x10] sm:$0xff]  ;;  %v221_v3 = vmax.f32 %v218_v0, %v466_v1  ;;  %v468_v4 = vld [vmem:[%s182_s20 + $0x18] sm:$0xff]  ;;  %v217_v32 = vld [vmem:[%s848_s27] sm:$0xff]  ;;  %s349_s16 = sshll.u32 %s216_s15, 4  ;;  %s347_s6 = scalar_lea.hbm %s907_s2, %s471_s8  ;;  %s350_s16 = int_to_ptr.vmem [resolvable:$true] %s349_s16 }
  0x3e   : > { %v248_v23 = vshrl.u32 %v247_v19, 7  ;;  %v854_v24 = vand.u32 127, %v247_v19  ;;  %s336_s18 = scalar_lea.sflag [#allocation4], %s836_s25  ;;  %s621_s19 = scalar_lea.vmem %s350_s16, 128 }
  0x3f   : > { %v224_v5 = vmax.f32 %v221_v3, %v467_v2  ;;  %p622_p8 = scmp.ne.s32.totalorder %s350_s16, %s621_s19  ;;  %s712_s20 = smov [#allocation7]  }
  0x40   : > { %v254_v25 = vmul.u32 128, %v248_v23  ;;  %vm308_vm1 = vcmp.eq.s32.totalorder %v854_v24, 0  ;;  %vm311_vm2 = vcmp.eq.s32.totalorder %v854_v24, 1  ;;  %vm315_vm3 = vcmp.eq.s32.totalorder %v854_v24, 2  ;;  %s625_s26 = sshll.u32 %s712_s20, 4  ;;  %s626_s26 = int_to_ptr.vmem [resolvable:$false] %s625_s26 }
  0x41   : > { %v227_v6 = vmax.f32 %v224_v5, %v468_v4  ;;  %vm319_vm4 = vcmp.eq.s32.totalorder %v854_v24, 3  ;;  %vm323_vm5 = vcmp.eq.s32.totalorder %v854_v24, 4  ;;  %p623_p0 = pnand %p622_p8, %p779_p9  ;;  %s627_s12 = scalar_lea.vmem %s626_s26, 256 }
  0x42   : > { %v255_v26 = vadd.s32 %v254_v25, %v854_v24  ;;  %p628_p5 = scmp.lt.s32.totalorder %s350_s16, %s626_s26  ;;  %p629_p6 = scmp.lt.s32.totalorder %s627_s12, %s621_s19 }
  0x43   : > { %v228_v7 = vsub.f32 %v218_v0, %v227_v6  ;;  %v231_v8 = vsub.f32 %v466_v1, %v227_v6  ;;  %v235_v9 = vsub.f32 %v467_v2, %v227_v6  ;;  %v239_v10 = vsub.f32 %v468_v4, %v227_v6  ;;  %p624_p2 = pneg %p623_p0 }
  0x44   : > { %vm256_vm0 = vcmp.lt.s32.totalorder %v255_v26, 256  ;;  %p630_p4 = por %p629_p6, %p628_p5 }
  0x45   : > { %v229_v11 = vmul.f32 1.442695, %v228_v7  ;;  %v232_v12 = vmul.f32 1.442695, %v231_v8  ;;  %v236_v13 = vmul.f32 1.442695, %v235_v9 }
  0x46   : > { %v240_v14 = vmul.f32 1.442695, %v239_v10  ;;  %v469_v29 = vsel %vm256_vm0, 1.0, %v711_v28  ;;  %p631_p7 = pnand %p630_p4, %p624_p2 }
  0x47   : > { %555 = vpow2.f32 %v229_v11 }
  0x48   : > { %557 = vpow2.f32 %v232_v12 }
  0x49   : > { %559 = vpow2.f32 %v236_v13 }
  0x4a   : > { %561 = vpow2.f32 %v240_v14 }
  0x54   : > { %v556_v15 = vpop.eup %555 }
  0x55   : > { %v558_v16 = vpop.eup %557 }
  0x56   : > { %v560_v17 = vpop.eup %559  ;;  %v234_v18 = vadd.f32 %v558_v16, %v556_v15 }
  0x57   : > { %v562_v20 = vpop.eup %561 }
  0x58   : > { %v238_v21 = vadd.f32 %v560_v17, %v234_v18 }
  0x5a   : > { %v242_v22 = vadd.f32 %v562_v20, %v238_v21 }
  0x5c   : > { %563 = vrcp.f32 %v242_v22 }
  0x69   : > { %v564_v27 = vpop.eup %563 }
  0x6a   : > { %v246_v30 = vmul.f32 %v564_v27, %v558_v16  ;;  %v245_v31 = vmul.f32 %v564_v27, %v556_v15 }
  0x6c   : > { %v260_v33 = vmul.f32 %v469_v29, %v246_v30  ;;  %v259_v34 = vmul.f32 %v469_v29, %v245_v31  ;;  %v289_v35 = vmul.f32 %v246_v30, %v217_v32  ;;  %v270_v36 = vmul.f32 %v245_v31, %v217_v32 }
  0x6e   : > { %280 = vadd.xlane.f32.xlu1 %v260_v33  ;;  %261 = vadd.xlane.f32.xlu0 %v259_v34 }
  0x72   : > { %290 = vadd.xlane.f32.xlu1 %v289_v35  ;;  %271 = vadd.xlane.f32.xlu0 %v270_v36 }
  0x76   : > { %299 = vadd.xlane.f32.xlu0 %v217_v32 }
  0xf7   : > { %v281_v37 = vpop.xlane.xlu1 %280  ;;  %v262_v38 = vpop.xlane.xlu0 %261 }
  0xf8   : > { %v282_v39 = vrot.slane %v281_v37, 4  ;;  %v263_v40 = vrot.slane %v262_v38, 4 }
  0xfa   : > { %v283_v41 = vadd.f32 %v282_v39, %v281_v37  ;;  %v264_v42 = vadd.f32 %v263_v40, %v262_v38 }
  0xfb   : > { %v291_v43 = vpop.xlane.xlu1 %290  ;;  %v272_v44 = vpop.xlane.xlu0 %271 }
  0xfc   : > { %v284_v45 = vrot.slane %v283_v41, 2  ;;  %v265_v46 = vrot.slane %v264_v42, 2  ;;  %v292_v47 = vrot.slane %v291_v43, 4  ;;  %v273_v48 = vrot.slane %v272_v44, 4 }
  0xfe   : > { %v293_v49 = vadd.f32 %v292_v47, %v291_v43  ;;  %v274_v50 = vadd.f32 %v273_v48, %v272_v44  ;;  %v266_v51 = vadd.f32 %v265_v46, %v264_v42  ;;  %v285_v53 = vadd.f32 %v284_v45, %v283_v41 }
  0xff   : > { %v300_v52 = vpop.xlane.xlu0 %299 }
 0x100   : > { %v294_v54 = vrot.slane %v293_v49, 2  ;;  %v275_v55 = vrot.slane %v274_v50, 2  ;;  %v301_v56 = vrot.slane %v300_v52, 4  ;;  %v267_v57 = vrot.slane %v266_v51, 1 }
 0x101   : > { %v286_v62 = vrot.slane %v285_v53, 1 }
 0x102   : > { %v295_v58 = vadd.f32 %v294_v54, %v293_v49  ;;  %v302_v59 = vadd.f32 %v301_v56, %v300_v52  ;;  %v268_v60 = vadd.f32 %v267_v57, %v266_v51  ;;  %v276_v61 = vadd.f32 %v275_v55, %v274_v50 }
 0x103   : > { %v287_v5 = vadd.f32 %v286_v62, %v285_v53 }
 0x104   : > { %v303_v63 = vrot.slane %v302_v59, 2  ;;  %475 = vpush %v268_v60  ;;  %v277_v0 = vrot.slane %v276_v61, 1  ;;  %v296_v1 = vrot.slane %v295_v58, 1 }
 0x106   : > { %v304_v2 = vadd.f32 %v303_v63, %v302_v59  ;;  %v278_v3 = vadd.f32 %v277_v0, %v276_v61  ;;  %v297_v4 = vadd.f32 %v296_v1, %v295_v58 }
 0x108   : > { %477 = vpush %v278_v3  ;;  %v305_v6 = vrot.slane %v304_v2, 1 }
 0x109   : > { %479 = vpush %v287_v5 }
 0x10a   : > { %481 = vpush %v297_v4  ;;  %v306_v7 = vadd.f32 %v305_v6, %v304_v2 }
 0x10c   : > { %483 = vpush %v306_v7 }
 0x135   : > { %s476_s21 = spop %475 }
 0x136   : > { %v309_v8 = vstv %s476_s21 }
 0x137   : > { %v310_v10 = vsel %vm308_vm1, %v309_v8, 0.0 }
 0x139   : > { %s478_s28 = spop %477 }
 0x13a   : > { %v312_v9 = vstv %s478_s28  ;;  %s480_s29 = spop %479 }
 0x13b   : > { %v313_v11 = vsel %vm311_vm2, %v312_v9, 0.0  ;;  %v316_v12 = vstv %s480_s29  ;;  %s482_s3 = spop %481 }
 0x13c   : > { %v314_v13 = vadd.f32 %v313_v11, %v310_v10  ;;  %v320_v14 = vstv %s482_s3  ;;  %v317_v15 = vsel %vm315_vm3, %v316_v12, 0.0 }
 0x13d   : > { %s484_s7 = spop %483  ;;  %v321_v18 = vsel %vm319_vm4, %v320_v14, 0.0 }
 0x13e   : > { %v318_v16 = vadd.f32 %v317_v15, %v314_v13  ;;  %v324_v17 = vstv %s484_s7 }
 0x13f   : > { %v325_v20 = vsel %vm323_vm5, %v324_v17, 0.0 }
 0x140   : > { %v322_v19 = vadd.f32 %v321_v18, %v318_v16 }
 0x142   : > { %v326_v21 = vadd.f32 %v325_v20, %v322_v19 }
 0x144   : > { %334 = vst [vmem:[%s216_s15] sm:$0xff] %v326_v21 }
 0x145   : > { %634 = shalt.err (!%p631_p7)
}
 0x146   : > { %s635_s5 = scalar_lea.hbm %s347_s6, 128  ;;  %s639_s21 = scalar_lea.hbm %s907_s2, 256 }
 0x147   : > { %p636_p1 = scmp.ne.s32.totalorder %s347_s6, %s635_s5  ;;  %p640_p3 = scmp.lt.s32.totalorder %s347_s6, %s907_s2 }
 0x148   : > { %p641_p8 = scmp.lt.s32.totalorder %s639_s21, %s635_s5 }
 0x149   : > { %p637_p10 = pnand %p636_p1, %p779_p9 }
 0x14a   : > { %p642_p0 = por %p641_p8, %p640_p3 }
 0x14b   : > { %p638_p13 = pneg %p637_p10 }
 0x14d   : > { %p643_p12 = pnand %p642_p0, %p638_p13 }
 0x14f   : > { %646 = shalt.err (!%p643_p12)
}
 0x150   : > { %489 = dma.vmem_to_hbm [thread:$0]  (%p779_p9), %s350_s16, 128, %s347_s6, %s336_s18  }
 0x151 PF: > { %s361_s3 = sand.u32 1, %s685_s9   ;;  %p914_p2 = scmp.ge.s32.totalorder %s705_s14, 2 }
 0x152   : > { %s362_s7 = scalar_lea.sflag [#allocation4], %s361_s3 }
 0x153   : > { %p499_p5 = pnand %p914_p2, %p786_p11 }
 0x155   : > { %p500_p6 = pneg %p499_p5 }
 0x157   : > { %680 = dma.done.wait (%p500_p6), %s362_s7, 128  }
 0x158   : > { %682 = vsyncadd (%p500_p6), %s362_s7, 4294967168  ;;  %s21_s14 = sadd.s32 1, %s705_s14   ;;  %s915_s9 = smov %s689_s10 }
 0x159   : > { %p18_p4 = scmp.ge.s32.totalorder %s21_s14, 4   ;;  %s916_s10 = smov %s693_s11 }
 0x15a   : > { %s917_s11 = smov %s784_s23  ;;  %s918_s12 = smov %s701_s13 }
 0x15b   : > { %s919_s13 = smov %s921_s17  ;;  %20 = sbr.rel (!%p18_p4) target bundleno = 8 (0x8), region = 93 }
 0x160   :  { %367 = vsyncpa [#allocation3], 1 }
 0x161   :  { %369 = vsyncpa [#allocation3 + $0x1], 1 }
 0x162   :  { %370 = vsyncpa [#allocation6], 1 }
 0x163   :  { %372 = vsyncpa [#allocation6 + $0x1], 1 }
 0x164   :  { %373 = vsyncpa [#allocation4], 1 }
 0x165   :  { %375 = vsyncpa [#allocation4 + $0x1], 1 }

</bundles_post_ra>
